<compile_context>
chip_gen: v6e
topology: v6e:2x2x1
jax: 0.10.0
libtpu: 0.0.40
codegen_flags: <defaults>
</compile_context>

<pallas_src>
import functools

import jax
import jax.numpy as jnp
import numpy as np
from jax.experimental import pallas as pl
from jax.experimental.pallas import tpu as pltpu


# ---------------------------------------------------------------------------
# Pallas kernel
# ---------------------------------------------------------------------------
def _l2norm_kernel(x_ref, w_ref, o_ref, *, eps):
    """One (batch, spatial-tile) block: x is (1, C, T), w is (C, 1)."""
    x = x_ref[0].astype(jnp.float32)                       # (C, T)
    ssq = jnp.sum(x * x, axis=0, keepdims=True)            # (1, T) sublane reduce
    inv = 1.0 / (jnp.sqrt(ssq) + eps)                      # matches sqrt(...)+eps
    o_ref[0] = (x * inv * w_ref[...]).astype(o_ref.dtype)  # (C,T)*(1,T)*(C,1)


# ---------------------------------------------------------------------------
# Tile selection
# ---------------------------------------------------------------------------
def _pick_hw_tile(hw, c, n, itemsize):
    """Spatial tile T (multiple of 128) for the (C, T) block.

    - per-block f32 footprint capped at ~4 MiB (f32 itemsize even for bf16
      inputs: the kernel upcasts, so the in-kernel temporaries are f32-sized),
    - clamped to <= 2048 lanes (flat part of the HBM-roofline curve),
    - halved (floor 128) until the grid has >= 8 steps so the pipeline and
      v7x's two TensorCores have work to overlap.
    """
    LANES = 128
    budget_bytes = 4 << 20
    eff_itemsize = max(itemsize, 4)
    t_budget = max(LANES, (budget_bytes // (c * eff_itemsize)) // LANES * LANES)
    hw_padded = pl.cdiv(hw, LANES) * LANES
    t = min(hw_padded, min(t_budget, 2048))
    while t > LANES and n * pl.cdiv(hw, t) < 8:
        t = max(LANES, (t // 2) // LANES * LANES)
    return t


# ---------------------------------------------------------------------------
# Wrapper
# ---------------------------------------------------------------------------
def l2norm(x_nchw, weight, eps=1e-10):
    """x_nchw: (N, C, H, W); weight: (C,). Returns same shape/dtype as x_nchw."""
    N, C, H, W = x_nchw.shape
    hw = H * W
    x2 = x_nchw.reshape(N, C, hw)                          # contiguous view, free
    w2 = weight.reshape(C, 1).astype(jnp.float32)

    T = _pick_hw_tile(hw, C, N, jnp.dtype(x2.dtype).itemsize)
    grid = (N, pl.cdiv(hw, T))                             # cdiv grid, masked tail

    kern = functools.partial(_l2norm_kernel, eps=eps)
    out = pl.pallas_call(
        kern,
        out_shape=jax.ShapeDtypeStruct((N, C, hw), x2.dtype),
        grid=grid,
        in_specs=[
            pl.BlockSpec((1, C, T), lambda n, t: (n, 0, t)),
            pl.BlockSpec((C, 1), lambda n, t: (0, 0)),     # resident weight block
        ],
        out_specs=pl.BlockSpec((1, C, T), lambda n, t: (n, 0, t)),
        compiler_params=pltpu.CompilerParams(
            dimension_semantics=("parallel", "parallel"),
            vmem_limit_bytes=48 * 1024 * 1024,             # < v7x 64 MiB physical
        ),
    )(x2, w2)
    return out.reshape(N, C, H, W)


# ---------------------------------------------------------------------------
# Pure-JAX reference (silent correctness check)
# ---------------------------------------------------------------------------
def _ref_l2norm(x, weight, eps=1e-10):
    norm = jnp.sqrt(jnp.sum(x * x, axis=1, keepdims=True)) + eps
    return weight[None, :, None, None] * (x / norm)


# ---------------------------------------------------------------------------
if __name__ == "__main__":
    key = jax.random.PRNGKey(0)
    k_x, k_w, k_x2, k_w2, k_x3, k_w3 = jax.random.split(key, 6)

    gamma = 20.0                                           # L2Norm(..., scale=20)

    # 1) Small config consistent with the module (batch=2, channels=4, spatial=16).
    N, C, H, W = 2, 4, 16, 16
    x = jax.random.normal(k_x, (N, C, H, W), jnp.float32)
    # reset_parameters() sets the weight to the constant `gamma`; perturb
    # slightly so the per-channel broadcast is actually exercised.
    weight = gamma + 0.1 * jax.random.normal(k_w, (C,), jnp.float32)

    out = jax.block_until_ready(l2norm(x, weight))
    ref = jax.block_until_ready(_ref_l2norm(x, weight))
    assert out.shape == (N, C, H, W)
    np.testing.assert_allclose(np.asarray(out), np.asarray(ref),
                               rtol=1e-5, atol=1e-5)

    # 2) SSD-style config (C=512, 38x38 feature map -> hw=1444, NOT a multiple
    #    of 128) to exercise the cdiv grid and the masked tail block.
    N2, C2, H2, W2 = 2, 512, 38, 38
    x_big = jax.random.normal(k_x2, (N2, C2, H2, W2), jnp.float32)
    w_big = gamma + 0.1 * jax.random.normal(k_w2, (C2,), jnp.float32)
    out_big = jax.block_until_ready(l2norm(x_big, w_big))
    ref_big = jax.block_until_ready(_ref_l2norm(x_big, w_big))
    np.testing.assert_allclose(np.asarray(out_big), np.asarray(ref_big),
                               rtol=1e-5, atol=1e-5)

    # 3) bf16 input path (kernel accumulates in f32, stores bf16).
    N3, C3, H3, W3 = 2, 16, 20, 20
    x_bf = jax.random.normal(k_x3, (N3, C3, H3, W3), jnp.float32).astype(jnp.bfloat16)
    w_bf = gamma + 0.1 * jax.random.normal(k_w3, (C3,), jnp.float32)
    out_bf = jax.block_until_ready(l2norm(x_bf, w_bf))
    ref_bf = _ref_l2norm(x_bf.astype(jnp.float32), w_bf)
    np.testing.assert_allclose(np.asarray(out_bf, dtype=np.float32),
                               np.asarray(ref_bf, dtype=np.float32),
                               rtol=2e-2, atol=2e-2)

    print("KERNEL_OK")
</pallas_src>

<mosaic_0001>
module attributes {stable_mosaic.version = 11 : i64} {
  func.func @_l2norm_kernel(%arg0: i32, %arg1: i32, %arg2: memref<1x4x128xf32, #tpu.memory_space<vmem>>, %arg3: memref<4x1xf32, #tpu.memory_space<vmem>>, %arg4: memref<1x4x128xf32, #tpu.memory_space<vmem>>) attributes {dimension_semantics = [#tpu.dimension_semantics<parallel>, #tpu.dimension_semantics<parallel>], iteration_bounds = array<i64: 2, 2>, scalar_prefetch = 0 : i64, scratch_operands = 0 : i64, tpu.core_type = #tpu.core_type<tc>, window_params = [{transform_indices = @transform_0, window_bounds = array<i64: 1, 4, 128>}, {pipeline_mode = #tpu.pipeline_mode<synchronous>, transform_indices = @transform_1, window_bounds = array<i64: 4, 1>}, {transform_indices = @transform_2, window_bounds = array<i64: 1, 4, 128>}]} {
    %c0 = arith.constant 0 : index
    %c0_0 = arith.constant 0 : index
    %c0_1 = arith.constant 0 : index
    %0 = vector.load %arg2[%c0, %c0_0, %c0_1] : memref<1x4x128xf32, #tpu.memory_space<vmem>>, vector<1x4x128xf32>
    %1 = vector.shape_cast %0 : vector<1x4x128xf32> to vector<4x128xf32>
    %2 = arith.mulf %1, %1 : vector<4x128xf32>
    %cst = arith.constant dense<0.000000e+00> : vector<128xf32>
    %3 = vector.multi_reduction <add>, %2, %cst [0] : vector<4x128xf32> to vector<128xf32>
    %4 = vector.shape_cast %3 : vector<128xf32> to vector<1x128xf32>
    %5 = math.sqrt %4 : vector<1x128xf32>
    %cst_2 = arith.constant 1.000000e-10 : f32
    %6 = vector.broadcast %cst_2 : f32 to vector<1x128xf32>
    %7 = arith.addf %5, %6 : vector<1x128xf32>
    %cst_3 = arith.constant 1.000000e+00 : f32
    %8 = vector.broadcast %cst_3 : f32 to vector<1x128xf32>
    %9 = arith.divf %8, %7 : vector<1x128xf32>
    %10 = vector.broadcast %9 : vector<1x128xf32> to vector<4x128xf32>
    %11 = arith.mulf %1, %10 : vector<4x128xf32>
    %c0_4 = arith.constant 0 : index
    %c0_5 = arith.constant 0 : index
    %12 = vector.load %arg3[%c0_4, %c0_5] : memref<4x1xf32, #tpu.memory_space<vmem>>, vector<4x1xf32>
    %13 = vector.broadcast %12 : vector<4x1xf32> to vector<4x128xf32>
    %14 = arith.mulf %11, %13 : vector<4x128xf32>
    %c0_6 = arith.constant 0 : index
    %c0_7 = arith.constant 0 : index
    %c0_8 = arith.constant 0 : index
    %15 = vector.load %arg4[%c0_6, %c0_7, %c0_8] : memref<1x4x128xf32, #tpu.memory_space<vmem>>, vector<1x4x128xf32>
    %16 = vector.shape_cast %15 : vector<1x4x128xf32> to vector<4x128xf32>
    %17 = vector.shape_cast %14 : vector<4x128xf32> to vector<1x4x128xf32>
    tpu.vector_store %arg4[%c0_6, %c0_7, %c0_8], %17 {strides = array<i32>} : memref<1x4x128xf32, #tpu.memory_space<vmem>>, vector<1x4x128xf32>,
    return
  }
  func.func @transform_0(%arg0: i32, %arg1: i32) -> (i32, i32, i32) {
    %c0_i32 = arith.constant 0 : i32
    %c0_i32_0 = arith.constant 0 : i32
    return %arg0, %c0_i32, %arg1 : i32, i32, i32
  }
  func.func @transform_1(%arg0: i32, %arg1: i32) -> (i32, i32) {
    %c0_i32 = arith.constant 0 : i32
    %c0_i32_0 = arith.constant 0 : i32
    %c0_i32_1 = arith.constant 0 : i32
    return %c0_i32, %c0_i32_0 : i32, i32
  }
  func.func @transform_2(%arg0: i32, %arg1: i32) -> (i32, i32, i32) {
    %c0_i32 = arith.constant 0 : i32
    %c0_i32_0 = arith.constant 0 : i32
    return %arg0, %c0_i32, %arg1 : i32, i32, i32
  }
}

</mosaic_0001>

<bundles_post_ra>
// kernel: tpu_custom_call.1
= control target key start
LH: loop header
LB: loop body
LE: loop exit
PB: predicated region body
PF: predicated region fallthrough
CT: control target
= control target key end

     0   :  { %7 = vsyncpa [#allocation3], 0  ;;  %s713_s0 = inlined_call_operand.hbm [shape: f32[2,4,256], index: 0, kind: input, shape index: {}]   ;;  %s714_s1 = inlined_call_operand.vmem [shape: f32[4,1], index: 1, kind: input, shape index: {}]   ;;  %s715_s2 = inlined_call_operand.hbm [shape: f32[2,4,256], index: 2, kind: output, shape index: {}]  }
   0x1   :  { %9 = vsyncpa [#allocation3 + $0x1], 0 }
   0x2   :  { %10 = vsyncpa [#allocation4], 0 }
   0x3   :  { %12 = vsyncpa [#allocation4 + $0x1], 0  ;;  %s550_s9 = smov 0   ;;  %s552_s10 = smov 0  }
   0x4   :  { %s554_s11 = smov 0   ;;  %s556_s12 = smov 0  }
   0x5   :  { %s558_s13 = smov 0   ;;  %s560_s14 = smov 0  }
   0x6   :  { %s562_s15 = smov 0   ;;  %s564_s16 = smov 0  }
   0x7 LB: > { %s307_s17 = sadd.s32 4294967295, %s530_s16   ;;  %s308_s18 = sadd.s32 4294967294, %s530_s16   ;;  %s530_s16 = sphi %s564_s16, %s18_s16   ;;  %s526_s15 = sphi %s562_s15, %s728_s15   ;;  %s522_s14 = sphi %s560_s14, %s727_s14   ;;  %s518_s13 = sphi %s558_s13, %s726_s13   ;;  %s514_s12 = sphi %s556_s12, %s725_s12   ;;  %s510_s11 = sphi %s554_s11, %s724_s11   ;;  %s506_s10 = sphi %s552_s10, %s723_s10   ;;  %s502_s9 = sphi %s550_s9, %s722_s9  }
   0x8   : > { %s27_s19 = sadd.s32 1, %s522_s14  ;;  %s30_s20 = sadd.s32 1, %s526_s15 }
   0x9   : > { %p28_p0 = scmp.ge.s32.totalorder %s27_s19, 2  ;;  %s39_s21 = sadd.s32 1, %s510_s11 }
   0xa   : > { %p46_p1 = scmp.ne.s32.totalorder %s510_s11, %s506_s10  ;;  %p47_p2 = scmp.eq.s32.totalorder %s530_s16, 0 }
   0xb   : > { %s730_s19 = smov (%p28_p0, %s27_s19), 0  ;;  %s732_s20 = smov (!%p28_p0, %s30_s20), %s526_s15 }
   0xc   : > { %s35_s22 = ssub.s32 %s522_s14, %s730_s19  ;;  %p603_p3 = por %p47_p2, %p46_p1 }
   0xd   : > { %p32_p4 = scmp.ge.s32.totalorder %s732_s20, 2  ;;  %p52_p5 = scmp.ne.s32.totalorder %s506_s10, %s502_s9 }
   0xe   : > { %p53_p6 = scmp.eq.s32.totalorder %s307_s17, 0  ;;  %p99_p7 = scmp.eq.s32.totalorder %s307_s17, 3 }
   0xf   : > { %s734_s20 = smov (%p32_p4, %s732_s20), 0  ;;  %p105_p10 = scmp.eq.s32.totalorder %s308_s18, 3 }
  0x10   : > { %p611_p8 = por %p53_p6, %p52_p5  ;;  %p615_p9 = por %p99_p7, %p46_p1 }
  0x11   : > { %s34_s26 = ssub.s32 %s526_s15, %s734_s20  ;;  %p621_p12 = por %p105_p10, %p52_p5 }
  0x12   : > { %s36_s27 = sor.u32 %s35_s22, %s34_s26  ;;  %p334_p13 = scmp.lt.s32.totalorder %s530_s16, 4 }
  0x13   : > { %p37_p11 = scmp.eq.s32.totalorder %s36_s27, 0  ;;  %s128_s29 = sand.u32 1, %s510_s11  }
  0x14   : > { %s719_s28 = scalar_select %p621_p12, 1, 0 }
  0x15   : > { %s628_s30 = scalar_select %p37_p11, %s510_s11, %s39_s21  }
  0x16   : > { %s311_s3 = sshll.u32 %s128_s29, 2  ;;  %s312_s4 = sshll.u32 %s526_s15, 1 }
  0x17   : > { %s137_s5 = sadd.s32 %s522_s14, %s312_s4  ;;  %s132_s6 = scalar_lea.vmem [#allocation2], %s311_s3 }
  0x18   : > { %s141_s7 = sshll.u32 %s132_s6, 4  ;;  %s313_s8 = sshll.u32 %s137_s5, 6  ;;  %s142_s7 = int_to_ptr.vmem [resolvable:$true] %s141_s7 }
  0x19   : > { %s139_s22 = scalar_lea.hbm %s713_s0, %s313_s8  ;;  %p637_p0 = pnand %p334_p13, %p603_p3 }
  0x1a   : > { %p314_p1 = scmp.ge.s32.totalorder %s530_s16, 1  ;;  %p146_p2 = scmp.lt.s32.totalorder %s530_s16, 5 }
  0x1b   : > { %s129_s21 = scalar_lea.sflag [#allocation3], %s128_s29  ;;  %p408_p4 = pneg %p637_p0 }
  0x1c   : > { %s419_s27 = scalar_lea.vmem %s142_s7, 64  ;;  %s532_s3 = smov [#allocation2]  }
  0x1d   : > { %p420_p5 = scmp.ne.s32.totalorder %s142_s7, %s419_s27  ;;  %s424_s4 = sshll.u32 %s532_s3, 4  ;;  %s425_s4 = int_to_ptr.vmem [resolvable:$false] %s424_s4 }
  0x1e   : > { %s426_s5 = scalar_lea.vmem %s425_s4, 128  ;;  %p427_p10 = scmp.lt.s32.totalorder %s142_s7, %s425_s4 }
  0x1f   : > { %p422_p6 = pnand %p420_p5, %p408_p4  ;;  %p428_p11 = scmp.lt.s32.totalorder %s426_s5, %s419_s27 }
  0x21   : > { %p423_p7 = pneg %p422_p6  ;;  %p429_p3 = por %p428_p11, %p427_p10 }
  0x23   : > { %p430_p13 = pnand %p429_p3, %p423_p7 }
  0x25   : > { %433 = shalt.err (!%p430_p13)
}
  0x26   : > { %329 = dma.hbm_to_vmem [thread:$0]  (!%p637_p0), %s139_s22, 64, %s142_s7, %s129_s21  }
  0x27   : > { %p147_p12 = pnand %p314_p1, %p146_p2 }
  0x28   : > { %s652_s23 = sand.u32 (!%p147_p12), 1, %s506_s10  }
  0x29   : > { %150 = sbr.rel (%p147_p12) target bundleno = 188 (0xbc), region = 28  ;;  %s315_s29 = sshll.u32 (!%p147_p12), %s652_s23, 2 }
  0x2a   : > { %s153_s6 = scalar_lea.sflag (!%p147_p12), [#allocation3], %s652_s23  ;;  %s156_s8 = scalar_lea.vmem (!%p147_p12), [#allocation2], %s315_s29 }
  0x2e   : > { %493 = dma.done.wait (%p611_p8), %s153_s6, 64  }
  0x2f   : > { %495 = vsyncadd (%p611_p8), %s153_s6, 4294967232  ;;  %v533_v0 = vmov 0   ;;  %v198_v1 = vld [vmem:[%s714_s1] sm:$0xf]  ;;  %vm179_vm0 = vcmask 1043456   ;;  %s318_s24 = sshll.u32 %s518_s13, 1 }
  0x30   : > { %401 = vset.pattern.permute.xlu0 %v533_v0  ;;  %v177_v2 = vld [vmem:[%s156_s8] sm:$0xf]  ;;  %s218_s18 = sadd.s32 %s514_s12, %s318_s24  ;;  %s176_s26 = scalar_lea.vmem [#allocation5], %s315_s29 }
  0x31   : > { %201 = vperm.xlu0 %401, %v198_v1   ;;  %v178_v3 = vmul.f32 %v177_v2, %v177_v2  ;;  %s319_s22 = sshll.u32 %s218_s18, 6  ;;  %s222_s21 = sshll.u32 %s176_s26, 4  ;;  %s223_s21 = int_to_ptr.vmem [resolvable:$true] %s222_s21 }
  0x32   : > { %s220_s4 = scalar_lea.hbm %s715_s2, %s319_s22  ;;  %s207_s5 = scalar_lea.sflag [#allocation4], %s652_s23 }
  0x33   : > { %v180_v4 = vsel %vm179_vm0, %v178_v3, 0.0  ;;  %s434_s6 = scalar_lea.vmem %s223_s21, 64  ;;  %s534_s12 = smov [#allocation5]  }
  0x34   : > { %v181_v5 = vrot.slane %v180_v4, 4  ;;  %p435_p8 = scmp.ne.s32.totalorder %s223_s21, %s434_s6  ;;  %s438_s13 = sshll.u32 %s534_s12, 4  ;;  %s439_s13 = int_to_ptr.vmem [resolvable:$false] %s438_s13 }
  0x35   : > { %s440_s8 = scalar_lea.vmem %s439_s13, 128  ;;  %p441_p1 = scmp.lt.s32.totalorder %s223_s21, %s439_s13 }
  0x36   : > { %v182_v6 = vadd.f32 %v181_v5, %v180_v4  ;;  %p436_p12 = pnand %p435_p8, %p615_p9  ;;  %p442_p2 = scmp.lt.s32.totalorder %s440_s8, %s434_s6 }
  0x38   : > { %v183_v7 = vrot.slane %v182_v6, 2  ;;  %p437_p0 = pneg %p436_p12  ;;  %p443_p4 = por %p442_p2, %p441_p1 }
  0x3a   : > { %v184_v8 = vadd.f32 %v183_v7, %v182_v6  ;;  %p444_p5 = pnand %p443_p4, %p437_p0 }
  0x3c   : > { %v185_v9 = vrot.slane %v184_v8, 1 }
  0x3e   : > { %v186_v10 = vadd.f32 %v185_v9, %v184_v8 }
  0x40   : > { %402 = vrsqrt.f32 %v186_v10  ;;  %vm189_vm1 = vcmp.eq.f32.partialorder %v186_v10, inf  ;;  %v192_v13 = vand.u32 2147483648, %v186_v10  ;;  %vm191_vm2 = vcmp.eq.f32.partialorder %v186_v10, 0.0 }
  0x4d   : > { %v403_v11 = vpop.eup %402 }
  0x4e   : > { %v188_v12 = vmul.f32 %v403_v11, %v186_v10 }
  0x50   : > { %v190_v14 = vsel %vm189_vm1, %v186_v10, %v188_v12 }
  0x51   : > { %v193_v15 = vsel %vm191_vm2, %v192_v13, %v190_v14 }
  0x52   : > { %v194_v16 = vadd.f32 1e-10, %v193_v15 }
  0x54   : > { %404 = vrcp.f32 %v194_v16 }
  0x61   : > { %v405_v17 = vpop.eup %404 }
  0x62   : > { %v197_v18 = vmul.f32 %v405_v17, %v177_v2 }
  0xac   : > { %v202_v19 = vpop.permute.xlu0 %201 }
  0xad   : > { %v204_v20 = vmul.f32 %v202_v19, %v197_v18 }
  0xaf   : > { %205 = vst [vmem:[%s176_s26] sm:$0xf] %v204_v20 }
  0xb0   : > { %447 = shalt.err (!%p444_p5)
}
  0xb1   : > { %s448_s29 = scalar_lea.hbm %s220_s4, 64  ;;  %s452_s17 = scalar_lea.hbm %s715_s2, 256 }
  0xb2   : > { %p449_p6 = scmp.ne.s32.totalorder %s220_s4, %s448_s29  ;;  %p453_p11 = scmp.lt.s32.totalorder %s220_s4, %s715_s2 }
  0xb3   : > { %p454_p3 = scmp.lt.s32.totalorder %s452_s17, %s448_s29 }
  0xb4   : > { %p450_p7 = pnand %p449_p6, %p615_p9 }
  0xb5   : > { %p455_p13 = por %p454_p3, %p453_p11 }
  0xb6   : > { %p451_p10 = pneg %p450_p7 }
  0xb8   : > { %p456_p8 = pnand %p455_p13, %p451_p10 }
  0xba   : > { %459 = shalt.err (!%p456_p8)
}
  0xbb   : > { %324 = dma.vmem_to_hbm [thread:$0]  (%p615_p9), %s223_s21, 64, %s220_s4, %s207_s5  }
  0xbc PF: > { %p335_p12 = scmp.ge.s32.totalorder %s530_s16, 2  ;;  %s234_s22 = sand.u32 1, %s502_s9  }
  0xbd   : > { %p721_p0 = scmp.ne.s32.totalorder %s719_s28, 0  ;;  %s235_s26 = scalar_lea.sflag [#allocation4], %s234_s22 }
  0xbf   : > { %p331_p1 = pnand %p335_p12, %p721_p0 }
  0xc1   : > { %p332_p2 = pneg %p331_p1 }
  0xc3   : > { %497 = dma.done.wait (%p332_p2), %s235_s26, 64  }
  0xc4   : > { %499 = vsyncadd (%p332_p2), %s235_s26, 4294967232  ;;  %s18_s16 = sadd.s32 1, %s530_s16   ;;  %s722_s9 = smov %s506_s10 }
  0xc5   : > { %p15_p4 = scmp.ge.s32.totalorder %s18_s16, 6   ;;  %s723_s10 = smov %s510_s11 }
  0xc6   : > { %s724_s11 = smov %s628_s30  ;;  %s725_s12 = smov %s522_s14 }
  0xc7   : > { %s726_s13 = smov %s526_s15  ;;  %s727_s14 = smov %s730_s19 }
  0xc8   : > { %s728_s15 = smov %s734_s20  ;;  %17 = sbr.rel (!%p15_p4) target bundleno = 7 (0x7), region = 73 }
  0xcd   :  { %240 = vsyncpa [#allocation3], 1 }
  0xce   :  { %242 = vsyncpa [#allocation3 + $0x1], 1 }
  0xcf   :  { %243 = vsyncpa [#allocation4], 1 }
  0xd0   :  { %245 = vsyncpa [#allocation4 + $0x1], 1 }

</bundles_post_ra>
